<compile_context>
chip_gen: v7x
topology: tpu7x:2x2x1
jax: 0.10.0
libtpu: 0.0.40
codegen_flags: <defaults>
</compile_context>

<pallas_src>
import math
import functools

import jax
import jax.numpy as jnp
from jax.experimental import pallas as pl
from jax.experimental.pallas import tpu as pltpu

NEG_INF = -1e30  # finite "minus infinity": avoids inf-inf -> NaN corner cases


def attention_sublayer_kernel(x_ref, lnw_ref, lnb_ref, wqkv_ref, wo_ref,
                              o_ref, y_scr, acc_scr, mask_scr,
                              *, head_size, eps):
    h = pl.program_id(1)
    S = x_ref.shape[0]
    Hd = head_size

    # ---- per-batch prologue (head 0): LayerNorm, accumulator + mask init ----
    @pl.when(h == 0)
    def _():
        x = x_ref[...]                                               # (S, D) f32
        mean = jnp.mean(x, axis=-1, keepdims=True)
        var = jnp.mean((x - mean) ** 2, axis=-1, keepdims=True)      # biased, as reference
        y = (x - mean) * lnw_ref[...] * jax.lax.rsqrt(var + eps) + lnb_ref[...]
        y_scr[...] = y.astype(y_scr.dtype)                           # bf16 MXU operand
        acc_scr[...] = jnp.zeros_like(acc_scr)
        row = jax.lax.broadcasted_iota(jnp.int32, (S, S), 0)
        col = jax.lax.broadcasted_iota(jnp.int32, (S, S), 1)
        mask_scr[...] = jnp.where(col > row, NEG_INF, 0.0).astype(jnp.float32)

    # ---- per-head attention: bf16 on the MXU, f32 accumulation / softmax ----
    y = y_scr[...]                                                   # (S, D) bf16

    # Fused Q/K/V projection: one MXU matmul with N = 3*Hd output lanes.
    qkv = jnp.dot(y, wqkv_ref[...], preferred_element_type=jnp.float32)  # (S, 3*Hd)
    scale = 1.0 / math.sqrt(head_size)
    q = (qkv[:, :Hd] * scale).astype(jnp.bfloat16)                   # scale folded into q
    k = qkv[:, Hd:2 * Hd].astype(jnp.bfloat16)
    v = qkv[:, 2 * Hd:].astype(jnp.bfloat16)

    # q @ k^T without materializing a transpose (contract last dims)
    scores = jax.lax.dot_general(
        q, k, (((1,), (1,)), ((), ())),
        preferred_element_type=jnp.float32)                          # (S, S)
    scores = scores + mask_scr[...]

    # numerically stable softmax (f32); post-softmax dropout p=0 -> identity
    m = jnp.max(scores, axis=-1, keepdims=True)
    e = jnp.exp(scores - m)
    denom = jnp.sum(e, axis=-1, keepdims=True)
    r = pl.reciprocal(denom, approx=True)                            # EUP slot (nearly free)
    r = r * (2.0 - denom * r)                                        # 1 Newton step -> ~f32 accuracy
    w = e * r

    attn = jnp.dot(w.astype(jnp.bfloat16), v,
                   preferred_element_type=jnp.float32)               # (S, Hd)

    # per-head slice of the output projection: acc += attn_h @ wo[h*Hd:(h+1)*Hd, :]
    acc_scr[...] += jnp.dot(attn.astype(jnp.bfloat16), wo_ref[...],
                            preferred_element_type=jnp.float32)      # (S, D) lane-dense

    # ---- epilogue (last head): outer dropout(p=0) identity + residual -------
    @pl.when(h == pl.num_programs(1) - 1)
    def _():
        o_ref[...] = (acc_scr[...] + x_ref[...]).astype(o_ref.dtype)


def attention_sublayer(x, ln_w, ln_b, wq, wk, wv, wo, *, eps=1e-5):
    B, S, D = x.shape
    H, _, Hd = wq.shape
    assert H * Hd == D

    # bf16 weight copies for the MXU (f32 accumulation happens in-kernel).
    #   * wq/wk/wv concatenated to (H, D, 3*Hd): one fused projection matmul/head.
    #   * wo re-viewed as (H, Hd, D): row block h is exactly the slice of wo that
    #     the concatenated head-h output multiplies, so concat+matmul becomes a
    #     per-head accumulation with no transpose/reshape in the kernel.
    wqkv_b = jnp.concatenate([wq, wk, wv], axis=-1).astype(jnp.bfloat16)   # (H, D, 3*Hd)
    wo_b = wo.reshape(H, Hd, D).astype(jnp.bfloat16)

    kernel = functools.partial(attention_sublayer_kernel, head_size=Hd, eps=eps)

    return pl.pallas_call(
        kernel,
        out_shape=jax.ShapeDtypeStruct((B, S, D), x.dtype),
        grid_spec=pltpu.PrefetchScalarGridSpec(
            num_scalar_prefetch=0,
            grid=(B, H),                       # batch parallel, heads = reduction
            in_specs=[
                pl.BlockSpec((pl.Squeezed(), S, D), lambda b, h: (b, 0, 0)),       # x
                pl.BlockSpec((1, D), lambda b, h: (0, 0)),                         # ln weight
                pl.BlockSpec((1, D), lambda b, h: (0, 0)),                         # ln bias
                pl.BlockSpec((pl.Squeezed(), D, 3 * Hd), lambda b, h: (h, 0, 0)),  # [wq|wk|wv][h]
                pl.BlockSpec((pl.Squeezed(), Hd, D), lambda b, h: (h, 0, 0)),      # wo[h]
            ],
            out_specs=pl.BlockSpec((pl.Squeezed(), S, D), lambda b, h: (b, 0, 0)),
            scratch_shapes=[
                pltpu.VMEM((S, D), jnp.bfloat16),   # post-LayerNorm activations
                pltpu.VMEM((S, D), jnp.float32),    # output-projection accumulator
                pltpu.VMEM((S, S), jnp.float32),    # additive causal mask
            ],
        ),
        compiler_params=pltpu.CompilerParams(
            dimension_semantics=("parallel", "arbitrary")),
    )(x, ln_w.reshape(1, D), ln_b.reshape(1, D), wqkv_b, wo_b)


def attention_sublayer_ref(x, ln_w, ln_b, wq, wk, wv, wo, *, eps=1e-5):
    """Pure-JAX f32 reference mirroring the PyTorch module (eval / p_drop=0)."""
    head_size = wq.shape[-1]
    mean = jnp.mean(x, axis=-1, keepdims=True)
    var = jnp.mean((x - mean) ** 2, axis=-1, keepdims=True)
    y = (x - mean) * ln_w / jnp.sqrt(var + eps) + ln_b
    q = jnp.einsum('bsd,hdk->bhsk', y, wq)
    k = jnp.einsum('bsd,hdk->bhsk', y, wk)
    v = jnp.einsum('bsd,hdk->bhsk', y, wv)
    scores = jnp.einsum('bhsk,bhtk->bhst', q, k) / math.sqrt(head_size)
    S = x.shape[1]
    causal = jnp.where(jnp.triu(jnp.ones((S, S), bool), 1), -jnp.inf, 0.0)
    scores = scores + causal
    w = jax.nn.softmax(scores, axis=-1)
    attn = jnp.einsum('bhst,bhtk->bhsk', w, v)
    attn = jnp.transpose(attn, (0, 2, 1, 3)).reshape(x.shape[0], S, -1)
    return attn @ wo + x


if __name__ == "__main__":
    # small but lane-dense shapes: d_model multiple of 128 keeps stores unmasked
    B, S, D, H = 2, 8, 128, 4
    Hd = D // H

    key = jax.random.PRNGKey(0)
    kx, kq, kk, kv, ko = jax.random.split(key, 5)

    x = jax.random.normal(kx, (B, S, D), dtype=jnp.float32)

    # Deterministic init mirroring the module: uniform(-1/sqrt(d_model), 1/sqrt(d_model)),
    # layernorm weight = 1, bias = 0.
    bound = 1.0 / math.sqrt(D)
    wq = jax.random.uniform(kq, (H, D, Hd), jnp.float32, -bound, bound)
    wk = jax.random.uniform(kk, (H, D, Hd), jnp.float32, -bound, bound)
    wv = jax.random.uniform(kv, (H, D, Hd), jnp.float32, -bound, bound)
    wo = jax.random.uniform(ko, (D, D), jnp.float32, -bound, bound)
    ln_w = jnp.ones((D,), jnp.float32)
    ln_b = jnp.zeros((D,), jnp.float32)

    out = attention_sublayer(x, ln_w, ln_b, wq, wk, wv, wo)
    out = jax.block_until_ready(out)

    ref = attention_sublayer_ref(x, ln_w, ln_b, wq, wk, wv, wo)
    assert out.shape == (B, S, D)
    # bf16 MXU operands with f32 accumulation -> compare at bf16-level tolerance
    assert jnp.allclose(out, ref, atol=3e-2, rtol=3e-2), "mismatch vs reference"

    print("KERNEL_OK")
</pallas_src>

<mosaic_0001>
module attributes {stable_mosaic.version = 11 : i64} {
  func.func @attention_sublayer_kernel(%arg0: i32, %arg1: i32, %arg2: memref<1x8x128xf32, #tpu.memory_space<vmem>>, %arg3: memref<1x128xf32, #tpu.memory_space<vmem>>, %arg4: memref<1x128xf32, #tpu.memory_space<vmem>>, %arg5: memref<1x128x96xbf16, #tpu.memory_space<vmem>>, %arg6: memref<1x32x128xbf16, #tpu.memory_space<vmem>>, %arg7: memref<1x8x128xf32, #tpu.memory_space<vmem>>, %arg8: memref<8x128xbf16, #tpu.memory_space<vmem>>, %arg9: memref<8x128xf32, #tpu.memory_space<vmem>>, %arg10: memref<8x8xf32, #tpu.memory_space<vmem>>) attributes {dimension_semantics = [#tpu.dimension_semantics<parallel>, #tpu.dimension_semantics<arbitrary>], iteration_bounds = array<i64: 2, 4>, scalar_prefetch = 0 : i64, scratch_operands = 3 : i64, tpu.core_type = #tpu.core_type<tc>, window_params = [{transform_indices = @transform_0, window_bounds = array<i64: 1, 8, 128>}, {pipeline_mode = #tpu.pipeline_mode<synchronous>, transform_indices = @transform_1, window_bounds = array<i64: 1, 128>}, {pipeline_mode = #tpu.pipeline_mode<synchronous>, transform_indices = @transform_2, window_bounds = array<i64: 1, 128>}, {transform_indices = @transform_3, window_bounds = array<i64: 1, 128, 96>}, {transform_indices = @transform_4, window_bounds = array<i64: 1, 32, 128>}, {transform_indices = @transform_5, window_bounds = array<i64: 1, 8, 128>}]} {
    %c0_i32 = arith.constant 0 : i32
    %0 = arith.cmpi eq, %arg1, %c0_i32 : i32
    %1 = arith.extui %0 : i1 to i32
    %c0_i32_0 = arith.constant 0 : i32
    %2 = arith.cmpi ne, %1, %c0_i32_0 : i32
    scf.if %2 {
      %c0_22 = arith.constant 0 : index
      %c0_23 = arith.constant 0 : index
      %c0_24 = arith.constant 0 : index
      %44 = vector.load %arg2[%c0_22, %c0_23, %c0_24] : memref<1x8x128xf32, #tpu.memory_space<vmem>>, vector<1x8x128xf32>
      %45 = vector.shape_cast %44 : vector<1x8x128xf32> to vector<8x128xf32>
      %cst_25 = arith.constant dense<0.000000e+00> : vector<8xf32>
      %46 = vector.multi_reduction <add>, %45, %cst_25 [1] : vector<8x128xf32> to vector<8xf32>
      %47 = vector.shape_cast %46 : vector<8xf32> to vector<8x1xf32>
      %cst_26 = arith.constant 1.280000e+02 : f32
      %48 = vector.broadcast %cst_26 : f32 to vector<8x1xf32>
      %49 = arith.divf %47, %48 : vector<8x1xf32>
      %50 = vector.broadcast %49 : vector<8x1xf32> to vector<8x128xf32>
      %51 = arith.subf %45, %50 : vector<8x128xf32>
      %52 = arith.mulf %51, %51 : vector<8x128xf32>
      %cst_27 = arith.constant dense<0.000000e+00> : vector<8xf32>
      %53 = vector.multi_reduction <add>, %52, %cst_27 [1] : vector<8x128xf32> to vector<8xf32>
      %54 = vector.shape_cast %53 : vector<8xf32> to vector<8x1xf32>
      %cst_28 = arith.constant 1.280000e+02 : f32
      %55 = vector.broadcast %cst_28 : f32 to vector<8x1xf32>
      %56 = arith.divf %54, %55 : vector<8x1xf32>
      %57 = vector.broadcast %49 : vector<8x1xf32> to vector<8x128xf32>
      %58 = arith.subf %45, %57 : vector<8x128xf32>
      %c0_29 = arith.constant 0 : index
      %c0_30 = arith.constant 0 : index
      %59 = vector.load %arg3[%c0_29, %c0_30] : memref<1x128xf32, #tpu.memory_space<vmem>>, vector<1x128xf32>
      %60 = vector.broadcast %59 : vector<1x128xf32> to vector<8x128xf32>
      %61 = arith.mulf %58, %60 : vector<8x128xf32>
      %cst_31 = arith.constant 9.99999974E-6 : f32
      %62 = vector.broadcast %cst_31 : f32 to vector<8x1xf32>
      %63 = arith.addf %56, %62 : vector<8x1xf32>
      %64 = math.rsqrt %63 : vector<8x1xf32>
      %65 = vector.broadcast %64 : vector<8x1xf32> to vector<8x128xf32>
      %66 = arith.mulf %61, %65 : vector<8x128xf32>
      %c0_32 = arith.constant 0 : index
      %c0_33 = arith.constant 0 : index
      %67 = vector.load %arg4[%c0_32, %c0_33] : memref<1x128xf32, #tpu.memory_space<vmem>>, vector<1x128xf32>
      %68 = vector.broadcast %67 : vector<1x128xf32> to vector<8x128xf32>
      %69 = arith.addf %66, %68 : vector<8x128xf32>
      %70 = arith.truncf %69 : vector<8x128xf32> to vector<8x128xbf16>
      %c0_34 = arith.constant 0 : index
      %c0_35 = arith.constant 0 : index
      %71 = vector.load %arg8[%c0_34, %c0_35] : memref<8x128xbf16, #tpu.memory_space<vmem>>, vector<8x128xbf16>
      tpu.vector_store %arg8[%c0_34, %c0_35], %70 {strides = array<i32>} : memref<8x128xbf16, #tpu.memory_space<vmem>>, vector<8x128xbf16>,
      %cst_36 = arith.constant 0.000000e+00 : f32
      %72 = vector.broadcast %cst_36 : f32 to vector<8x128xf32>
      %c0_37 = arith.constant 0 : index
      %c0_38 = arith.constant 0 : index
      %73 = vector.load %arg9[%c0_37, %c0_38] : memref<8x128xf32, #tpu.memory_space<vmem>>, vector<8x128xf32>
      tpu.vector_store %arg9[%c0_37, %c0_38], %72 {strides = array<i32>} : memref<8x128xf32, #tpu.memory_space<vmem>>, vector<8x128xf32>,
      %74 = tpu.iota {dimensions = array<i32: 0>} : vector<8x8xi32>
      %75 = tpu.iota {dimensions = array<i32: 1>} : vector<8x8xi32>
      %76 = arith.cmpi sgt, %75, %74 : vector<8x8xi32>
      %cst_39 = arith.constant -1.000000e+30 : f32
      %cst_40 = arith.constant 0.000000e+00 : f32
      %77 = vector.broadcast %cst_39 : f32 to vector<8x8xf32>
      %78 = vector.broadcast %cst_40 : f32 to vector<8x8xf32>
      %79 = arith.select %76, %77, %78 : vector<8x8xi1>, vector<8x8xf32>
      %c0_41 = arith.constant 0 : index
      %c0_42 = arith.constant 0 : index
      %80 = vector.load %arg10[%c0_41, %c0_42] : memref<8x8xf32, #tpu.memory_space<vmem>>, vector<8x8xf32>
      tpu.vector_store %arg10[%c0_41, %c0_42], %79 {strides = array<i32>} : memref<8x8xf32, #tpu.memory_space<vmem>>, vector<8x8xf32>,
    } else {
    }
    %c0 = arith.constant 0 : index
    %c0_1 = arith.constant 0 : index
    %3 = vector.load %arg8[%c0, %c0_1] : memref<8x128xbf16, #tpu.memory_space<vmem>>, vector<8x128xbf16>
    %c0_2 = arith.constant 0 : index
    %c0_3 = arith.constant 0 : index
    %c0_4 = arith.constant 0 : index
    %4 = vector.load %arg5[%c0_2, %c0_3, %c0_4] : memref<1x128x96xbf16, #tpu.memory_space<vmem>>, vector<1x128x96xbf16>
    %5 = vector.shape_cast %4 : vector<1x128x96xbf16> to vector<128x96xbf16>
    %cst = arith.constant dense<0.000000e+00> : vector<8x96xf32>
    %6 = tpu.matmul %3, %5, %cst {dimension_numbers = #tpu.dot_dimension_numbers<[1], [0], [0], [1], [0, 0, 1, 1], [], []>} : vector<8x128xbf16>, vector<128x96xbf16>, vector<8x96xf32> -> vector<8x96xf32>
    %7 = vector.extract_strided_slice %6 {offsets = [0, 0], sizes = [8, 32], strides = [1, 1]} : vector<8x96xf32> to vector<8x32xf32>
    %cst_5 = arith.constant 0.176776692 : f32
    %8 = vector.broadcast %cst_5 : f32 to vector<8x32xf32>
    %9 = arith.mulf %7, %8 : vector<8x32xf32>
    %10 = arith.truncf %9 : vector<8x32xf32> to vector<8x32xbf16>
    %11 = vector.extract_strided_slice %6 {offsets = [0, 32], sizes = [8, 32], strides = [1, 1]} : vector<8x96xf32> to vector<8x32xf32>
    %12 = arith.truncf %11 : vector<8x32xf32> to vector<8x32xbf16>
    %13 = vector.extract_strided_slice %6 {offsets = [0, 64], sizes = [8, 32], strides = [1, 1]} : vector<8x96xf32> to vector<8x32xf32>
    %14 = arith.truncf %13 : vector<8x32xf32> to vector<8x32xbf16>
    %cst_6 = arith.constant dense<0.000000e+00> : vector<8x8xf32>
    %15 = tpu.matmul %10, %12, %cst_6 {dimension_numbers = #tpu.dot_dimension_numbers<[1], [1], [0], [0], [0, 0, 1, 0], [], []>} : vector<8x32xbf16>, vector<8x32xbf16>, vector<8x8xf32> -> vector<8x8xf32>
    %c0_7 = arith.constant 0 : index
    %c0_8 = arith.constant 0 : index
    %16 = vector.load %arg10[%c0_7, %c0_8] : memref<8x8xf32, #tpu.memory_space<vmem>>, vector<8x8xf32>
    %17 = arith.addf %15, %16 : vector<8x8xf32>
    %cst_9 = arith.constant dense<0xFF800000> : vector<8xf32>
    %18 = vector.multi_reduction <maximumf>, %17, %cst_9 [1] : vector<8x8xf32> to vector<8xf32>
    %19 = vector.shape_cast %18 : vector<8xf32> to vector<8x1xf32>
    %20 = vector.broadcast %19 : vector<8x1xf32> to vector<8x8xf32>
    %21 = arith.subf %17, %20 : vector<8x8xf32>
    %22 = math.exp %21 : vector<8x8xf32>
    %cst_10 = arith.constant dense<0.000000e+00> : vector<8xf32>
    %23 = vector.multi_reduction <add>, %22, %cst_10 [1] : vector<8x8xf32> to vector<8xf32>
    %24 = vector.shape_cast %23 : vector<8xf32> to vector<8x1xf32>
    %25 = tpu.reciprocal %24 {approx = true} : vector<8x1xf32> -> vector<8x1xf32>
    %26 = arith.mulf %24, %25 : vector<8x1xf32>
    %cst_11 = arith.constant 2.000000e+00 : f32
    %27 = vector.broadcast %cst_11 : f32 to vector<8x1xf32>
    %28 = arith.subf %27, %26 : vector<8x1xf32>
    %29 = arith.mulf %25, %28 : vector<8x1xf32>
    %30 = vector.broadcast %29 : vector<8x1xf32> to vector<8x8xf32>
    %31 = arith.mulf %22, %30 : vector<8x8xf32>
    %32 = arith.truncf %31 : vector<8x8xf32> to vector<8x8xbf16>
    %cst_12 = arith.constant dense<0.000000e+00> : vector<8x32xf32>
    %33 = tpu.matmul %32, %14, %cst_12 {dimension_numbers = #tpu.dot_dimension_numbers<[1], [0], [0], [1], [0, 0, 1, 1], [], []>} : vector<8x8xbf16>, vector<8x32xbf16>, vector<8x32xf32> -> vector<8x32xf32>
    %c0_13 = arith.constant 0 : index
    %c0_14 = arith.constant 0 : index
    %34 = vector.load %arg9[%c0_13, %c0_14] : memref<8x128xf32, #tpu.memory_space<vmem>>, vector<8x128xf32>
    %35 = arith.truncf %33 : vector<8x32xf32> to vector<8x32xbf16>
    %c0_15 = arith.constant 0 : index
    %c0_16 = arith.constant 0 : index
    %c0_17 = arith.constant 0 : index
    %36 = vector.load %arg6[%c0_15, %c0_16, %c0_17] : memref<1x32x128xbf16, #tpu.memory_space<vmem>>, vector<1x32x128xbf16>
    %37 = vector.shape_cast %36 : vector<1x32x128xbf16> to vector<32x128xbf16>
    %cst_18 = arith.constant dense<0.000000e+00> : vector<8x128xf32>
    %38 = tpu.matmul %35, %37, %cst_18 {dimension_numbers = #tpu.dot_dimension_numbers<[1], [0], [0], [1], [0, 0, 1, 1], [], []>} : vector<8x32xbf16>, vector<32x128xbf16>, vector<8x128xf32> -> vector<8x128xf32>
    %39 = arith.addf %34, %38 : vector<8x128xf32>
    %c0_19 = arith.constant 0 : index
    %c0_20 = arith.constant 0 : index
    %40 = vector.load %arg9[%c0_19, %c0_20] : memref<8x128xf32, #tpu.memory_space<vmem>>, vector<8x128xf32>
    tpu.vector_store %arg9[%c0_19, %c0_20], %39 {strides = array<i32>} : memref<8x128xf32, #tpu.memory_space<vmem>>, vector<8x128xf32>,
    %c3_i32 = arith.constant 3 : i32
    %41 = arith.cmpi eq, %arg1, %c3_i32 : i32
    %42 = arith.extui %41 : i1 to i32
    %c0_i32_21 = arith.constant 0 : i32
    %43 = arith.cmpi ne, %42, %c0_i32_21 : i32
    scf.if %43 {
      %c0_22 = arith.constant 0 : index
      %c0_23 = arith.constant 0 : index
      %44 = vector.load %arg9[%c0_22, %c0_23] : memref<8x128xf32, #tpu.memory_space<vmem>>, vector<8x128xf32>
      %c0_24 = arith.constant 0 : index
      %c0_25 = arith.constant 0 : index
      %c0_26 = arith.constant 0 : index
      %45 = vector.load %arg2[%c0_24, %c0_25, %c0_26] : memref<1x8x128xf32, #tpu.memory_space<vmem>>, vector<1x8x128xf32>
      %46 = vector.shape_cast %45 : vector<1x8x128xf32> to vector<8x128xf32>
      %47 = arith.addf %44, %46 : vector<8x128xf32>
      %c0_27 = arith.constant 0 : index
      %c0_28 = arith.constant 0 : index
      %c0_29 = arith.constant 0 : index
      %48 = vector.load %arg7[%c0_27, %c0_28, %c0_29] : memref<1x8x128xf32, #tpu.memory_space<vmem>>, vector<1x8x128xf32>
      %49 = vector.shape_cast %48 : vector<1x8x128xf32> to vector<8x128xf32>
      %50 = vector.shape_cast %47 : vector<8x128xf32> to vector<1x8x128xf32>
      tpu.vector_store %arg7[%c0_27, %c0_28, %c0_29], %50 {strides = array<i32>} : memref<1x8x128xf32, #tpu.memory_space<vmem>>, vector<1x8x128xf32>,
    } else {
    }
    return
  }
  func.func @transform_0(%arg0: i32, %arg1: i32) -> (i32, i32, i32) {
    %c0_i32 = arith.constant 0 : i32
    %c0_i32_0 = arith.constant 0 : i32
    %c0_i32_1 = arith.constant 0 : i32
    return %arg0, %c0_i32, %c0_i32_0 : i32, i32, i32
  }
  func.func @transform_1(%arg0: i32, %arg1: i32) -> (i32, i32) {
    %c0_i32 = arith.constant 0 : i32
    %c0_i32_0 = arith.constant 0 : i32
    %c0_i32_1 = arith.constant 0 : i32
    return %c0_i32, %c0_i32_0 : i32, i32
  }
  func.func @transform_2(%arg0: i32, %arg1: i32) -> (i32, i32) {
    %c0_i32 = arith.constant 0 : i32
    %c0_i32_0 = arith.constant 0 : i32
    %c0_i32_1 = arith.constant 0 : i32
    return %c0_i32, %c0_i32_0 : i32, i32
  }
  func.func @transform_3(%arg0: i32, %arg1: i32) -> (i32, i32, i32) {
    %c0_i32 = arith.constant 0 : i32
    %c0_i32_0 = arith.constant 0 : i32
    %c0_i32_1 = arith.constant 0 : i32
    return %arg1, %c0_i32, %c0_i32_0 : i32, i32, i32
  }
  func.func @transform_4(%arg0: i32, %arg1: i32) -> (i32, i32, i32) {
    %c0_i32 = arith.constant 0 : i32
    %c0_i32_0 = arith.constant 0 : i32
    %c0_i32_1 = arith.constant 0 : i32
    return %arg1, %c0_i32, %c0_i32_0 : i32, i32, i32
  }
  func.func @transform_5(%arg0: i32, %arg1: i32) -> (i32, i32, i32) {
    %c0_i32 = arith.constant 0 : i32
    %c0_i32_0 = arith.constant 0 : i32
    %c0_i32_1 = arith.constant 0 : i32
    return %arg0, %c0_i32, %c0_i32_0 : i32, i32, i32
  }
}

</mosaic_0001>

<bundles_post_ra>
// kernel: tpu_custom_call.1
= control target key start
LH: loop header
LB: loop body
LE: loop exit
PB: predicated region body
PF: predicated region fallthrough
CT: control target
= control target key end

     0   :  { %10 = vsyncpa [#allocation6], 0  ;;  %s1231_s0 = inlined_call_operand.vmem [shape: f32[2,8,128], index: 0, kind: input, shape index: {}]   ;;  %s1232_s1 = inlined_call_operand.vmem [shape: f32[1,128], index: 1, kind: input, shape index: {}]   ;;  %s1233_s2 = inlined_call_operand.vmem [shape: f32[1,128], index: 2, kind: input, shape index: {}]   ;;  %s1234_s3 = inlined_call_operand.vmem [shape: bf16[4,128,96], index: 3, kind: input, shape index: {}]   ;;  %s1235_s4 = inlined_call_operand.vmem [shape: bf16[4,32,128], index: 4, kind: input, shape index: {}]   ;;  %s1236_s5 = inlined_call_operand.hbm [shape: f32[2,8,128], index: 5, kind: output, shape index: {}]  }
   0x1   :  { %12 = vsyncpa [#allocation6 + $0x1], 0  ;;  %s1034_s18 = smov 0   ;;  %s1036_s19 = smov 0  }
   0x2   :  { %s1038_s20 = smov 0   ;;  %s1040_s21 = smov 0  }
   0x3   :  { %s1042_s22 = smov 0   ;;  %s1044_s23 = smov 0  }
   0x4   :  { %s1046_s24 = smov 0   ;;  %s1048_s25 = smov 0  }
   0x5 LB: > { %1241 = sst [smem:[#allocation8_spill]] %s988_s23  ;;  %s720_s26 = sadd.s32 4294967295, %s996_s25   ;;  %s996_s25 = sphi %s1048_s25, %s18_s25   ;;  %s992_s24 = sphi %s1046_s24, %s1251_s24   ;;  %s988_s23 = sphi %s1044_s23, %s1250_s23   ;;  %s984_s22 = sphi %s1042_s22, %s1249_s22   ;;  %s980_s21 = sphi %s1040_s21, %s1248_s21   ;;  %s976_s20 = sphi %s1038_s20, %s1254_s20   ;;  %s972_s19 = sphi %s1036_s19, %s1253_s19   ;;  %s968_s18 = sphi %s1034_s18, %s1252_s18  }
   0x6   : > { %1242 = sst [smem:[#allocation9_spill]] %s992_s24  ;;  %s721_s27 = sadd.s32 4294967294, %s996_s25  }
   0x7   : > { %s27_s28 = sadd.s32 1, %s988_s23  ;;  %s30_s29 = sadd.s32 1, %s992_s24 }
   0x8   : > { %p28_p0 = scmp.ge.s32.totalorder %s27_s28, 4  ;;  %p167_p1 = scmp.ne.s32.totalorder %s976_s20, %s972_s19 }
   0x9   : > { %p168_p2 = scmp.eq.s32.totalorder %s720_s26, 7  ;;  %p173_p4 = scmp.ne.s32.totalorder %s972_s19, %s968_s18 }
   0xa   : > { %s1256_s28 = smov (%p28_p0, %s27_s28), 0  ;;  %s1258_s29 = smov (!%p28_p0, %s30_s29), %s992_s24 }
   0xb   : > { %1243 = sst [smem:[#allocation10_spill]] %s1256_s28  ;;  %p1083_p3 = por %p168_p2, %p167_p1 }
   0xc   : > { %p32_p5 = scmp.ge.s32.totalorder %s1258_s29, 2  ;;  %p174_p6 = scmp.eq.s32.totalorder %s721_s27, 7 }
   0xd   : > { %p724_p7 = scmp.ge.s32.totalorder %s996_s25, 1  ;;  %p221_p8 = scmp.lt.s32.totalorder %s996_s25, 9 }
   0xe   : > { %s1260_s29 = smov (%p32_p5, %s1258_s29), 0  ;;  %p1093_p9 = por %p174_p6, %p173_p4 }
   0xf   : > { %1245 = sst [smem:[#allocation11_spill]] %s1260_s29  ;;  %p222_p10 = pnand %p724_p7, %p221_p8 }
  0x10   : > { %s154_s7 = ssub.s32 %s992_s24, %s1260_s29  ;;  %s157_s8 = sadd.s32 1, %s976_s20 }
  0x11   : > { %p155_p11 = scmp.eq.s32.totalorder %s154_s7, 0  ;;  %225 = sbr.rel (%p222_p10) target bundleno = 1711 (0x6af), region = 40 }
  0x12   : > { %s1238_s10 = sand.u32 (!%p222_p10), 1, %s972_s19   ;;  %p258_p12 = scmp.lt.s32.totalorder (!%p222_p10), %s984_s22, 1 }
  0x13   : > { %s1101_s9 = scalar_select %p155_p11, %s976_s20, %s157_s8  }
  0x14   : > { %s1107_s11 = sshll.u32 (!%p222_p10), %s1238_s10, 3  ;;  %p262_p13 = scmp.lt.s32.totalorder (!%p222_p10), %s980_s21, 3 }
  0x15   : > { %s257_s23 = scalar_lea.vmem (!%p222_p10), [#allocation5], %s1107_s11  ;;  %p731_p0 = scmp.ne.s32.totalorder (!%p222_p10), %s980_s21, 0 }
  0x18   : > { %s259_s12 = scalar_select %p258_p12, %s984_s22, 1 }
  0x19   : > { %s263_s13 = scalar_select %p262_p13, %s980_s21, 3 }
  0x1a   : > { %s726_s14 = sshll.u32 %s259_s12, 3  ;;  %276 = sbr.rel (%p731_p0) target bundleno = 341 (0x155), region = 44  ;;  %v309_v5 = vlaneseq (!%p731_p0)  ;;  %v998_v8 = vmov (!%p731_p0), 0.0   ;;  %vm315_vm1 = vcmask (!%p731_p0), 64512   ;;  %v732_v13 = vld [vmem:[%s1232_s1] ss:$0 sm:$0xff] (!%p731_p0) }
  0x1b   : > { %s1115_s17 = scalar_lea.vmem %s1231_s0, %s726_s14  ;;  %s752_s26 = sshll.u32 %s263_s13, 6  ;;  %308 = vst [vmem:[#allocation3] sm:$0xff] (!%p731_p0), %v998_v8  ;;  %v733_v16 = vld [vmem:[%s1233_s2] ss:$0 sm:$0xff] (!%p731_p0) }
  0x1c   : > { %s1120_s8 = scalar_lea.vmem %s1234_s3, %s752_s26  ;;  %s753_s29 = sshll.u32 %s263_s13, 4  ;;  %v277_v0 = vld [vmem:[%s1115_s17] sm:$0xff] (!%p731_p0)  ;;  %v310_v6 = vshrl.u32 (!%p731_p0), %v309_v5, 7  ;;  %v312_v7 = vand.u32 (!%p731_p0), 127, %v309_v5 }
  0x1d   : > { %s1125_s24 = scalar_lea.vmem %s1235_s4, %s753_s29  ;;  %278 = vadd.xlane.f32.xlu0 (!%p731_p0), %v277_v0 }
  0x1e   : > { %vm313_vm0 = vcmp.gt.s32.totalorder (!%p731_p0), %v312_v7, %v310_v6 }
  0x1f   : > { %v314_v9 = vsel (!%p731_p0), %vm313_vm0, -1e+30, %v998_v8 }
  0x20   : > { %316 = vst.msk [vmem:[#allocation4] sm:$0xff] (!%p731_p0), %vm315_vm1, %v314_v9 }
  0xaa   : > { %v279_v1 = vpop.xlane.xlu0 %278 }
  0xab   : > { %v281_v2 = vmul.f32 0.0078125, %v279_v1 }
  0xad   : > { %v282_v3 = vsub.f32 %v277_v0, %v281_v2 }
  0xaf   : > { %v283_v4 = vmul.f32 %v282_v3, %v282_v3  ;;  %v294_v14 = vmul.f32 %v732_v13, %v282_v3 }
  0xb1   : > { %284 = vadd.xlane.f32.xlu0 %v283_v4 }
 0x13e   : > { %v285_v10 = vpop.xlane.xlu0 %284 }
 0x13f   : > { %v286_v11 = vmul.f32 0.0078125, %v285_v10 }
 0x141   : > { %v295_v12 = vadd.f32 1e-05, %v286_v11 }
 0x143   : > { %886 = vrsqrt.f32 %v295_v12 }
 0x14d   : > { %v887_v15 = vpop.eup %886 }
 0x14e   : > { %v297_v17 = vmul.f32 %v887_v15, %v294_v14 }
 0x150   : > { %v305_v18 = vadd.f32 %v733_v16, %v297_v17 }
 0x152   : > { %v306_v19 = vpack.c.bf16 %v305_v18, %v305_v18 }
 0x154   : > { %307 = vst [vmem:[#allocation2] sm:$0xf] %v306_v19 }
 0x155 PF: > { %v888_v20 = vld [vmem:[%s1120_s8] sm:$0xff]   ;;  %v999_v21 = vmov 0.0   ;;  %v889_v22 = vld [vmem:[%s1120_s8 + $0x8] sm:$0xff]   ;;  %vm1000_vm2 = vmmov 0   ;;  %v890_v23 = vld [vmem:[%s1120_s8 + $0x10] sm:$0xff]   ;;  %s1001_s13 = smov 96  }
 0x156   : > { %770 = vmatprep.subr.bf16.mxu0 %v999_v21  ;;  %790 = vmatprep.subr.bf16.mxu1 %v999_v21  ;;  %v891_v24 = vld [vmem:[%s1120_s8 + $0x18] sm:$0xff]   ;;  %v892_v25 = vld [vmem:[%s1120_s8 + $0x20] sm:$0xff]   ;;  %v893_v26 = vld [vmem:[%s1120_s8 + $0x28] sm:$0xff]   ;;  %vm429_vm3 = vcmask 261120   ;;  %vm476_vm4 = vcmask 64512   ;;  %s1002_s14 = smov 64  }
 0x157   : > { %771 = vmatpush3.bf16.msra.mxu0 %v888_v20  ;;  %786 = vmatprep.mubr.msk.bf16.mxu0 %vm1000_vm2, %v999_v21  ;;  %v894_v27 = vld [vmem:[%s1120_s8 + $0x30] sm:$0xff]   ;;  %v895_v28 = vld [vmem:[%s1120_s8 + $0x38] sm:$0xff]   ;;  %vm497_vm5 = vcmask 1043456   ;;  %v896_v59 = vld [vmem:[%s1125_s24] sm:$0xff]   ;;  %p747_p1 = scmp.ne.s32.totalorder %s980_s21, 3 }
 0x158   : > { %772 = vmatprep.subr.bf16.mxu0 %v999_v21  ;;  %792 = vmatprep.mubr.msk.bf16.mxu1 %vm1000_vm2, %v999_v21  ;;  %v897_v61 = vld [vmem:[%s1125_s24 + $0x8] sm:$0xff]   ;;  %v609_v10 = vld [vmem:[%s1115_s17] sm:$0xff] (!%p747_p1) }
 0x159   : > { %v541_v3 = vld [vmem:[#allocation3] sm:$0xff] }
 0x15b   : > { %773 = vmatpush3.bf16.msra.mxu0 %v889_v22  ;;  %v317_v29 = vld [vmem:[#allocation2] sm:$0xf]  ;;  %v425_v39 = vld [vmem:[#allocation4] sm:$0xff] }
 0x15c   : > { %774 = vmatprep.subr.bf16.mxu0 %v999_v21 }
 0x15f   : > { %775 = vmatpush3.bf16.msra.mxu0 %v890_v23 }
 0x160   : > { %776 = vmatprep.subr.bf16.mxu0 %v999_v21 }
 0x163   : > { %777 = vmatpush3.bf16.msra.mxu0 %v891_v24 }
 0x164   : > { %778 = vmatprep.subr.bf16.mxu0 %v999_v21 }
 0x167   : > { %779 = vmatpush3.bf16.msra.mxu0 %v892_v25 }
 0x168   : > { %780 = vmatprep.subr.bf16.mxu0 %v999_v21 }
 0x16b   : > { %781 = vmatpush3.bf16.msra.mxu0 %v893_v26 }
 0x16c   : > { %782 = vmatprep.subr.bf16.mxu0 %v999_v21 }
 0x16f   : > { %783 = vmatpush3.bf16.msra.mxu0 %v894_v27 }
 0x170   : > { %784 = vmatprep.subr.bf16.mxu0 %v999_v21 }
 0x173   : > { %785 = vmatpush3.bf16.msra.mxu0 %v895_v28 }
 0x176   : > { %787 = vmatmul.mubr.bf16.vlgmr.msra.gmra.mrb[0].mxu0 %v317_v29 }
 0x249   : > { %v416_v30 = vpop.f32.mrb[0].mxu0 }
 0x24a   : > { %v788_v31 = vpop.f32.mrb[1].mxu0  ;;  %v424_v32 = vpack.c.bf16 %v416_v30, %v416_v30  ;;  %v422_v37 = vmul.f32 0.17677669, %v416_v30 }
 0x24b   : > { %v419_v33 = vpop.f32.mrb[2].mxu0 }
 0x24c   : > { %427 = vrot.lane.b32.xlu0 %v424_v32, %s1001_s13  ;;  %v789_v34 = vpop.f32.mrb[3].mxu0  ;;  %v423_v38 = vpack.c.bf16 %v422_v37, %v422_v37 }
 0x2be   : > { %v428_v35 = vpop.permute.xlu0 %427 }
 0x2bf   : > { %v434_v36 = vsel %vm429_vm3, %v428_v35, 0 }
 0x2c0   : > { %791 = vmatpush3.bf16.xpose.msra.mxu1 %v434_v36 }
 0x2c1   : > { %796 = vmatprep.subr.bf16.mxu1 %v999_v21 }
 0x2c7   : > { %793 = vmatmul.mubr.msk.bf16.vlgmr.msra.gmra.mrb[0].mxu1 %vm429_vm3, %v423_v38 }
 0x2c8   : > { %798 = vmatprep.mubr.msk.bf16.mxu1 %vm1000_vm2, %v999_v21 }
 0x39a   : > { %v470_v40 = vpop.f32.mrb[0].mxu1 }
 0x39b   : > { %v471_v41 = vadd.f32 %v470_v40, %v425_v39  ;;  %v794_v42 = vpop.f32.mrb[1].mxu1 }
 0x39c   : > { %v473_v43 = vpop.f32.mrb[2].mxu1 }
 0x39d   : > { %v795_v44 = vpop.f32.mrb[3].mxu1  ;;  %v477_v45 = vsel %vm476_vm4, %v471_v41, -inf }
 0x39e   : > { %478 = vmax.xlane.f32.xlu0 %v477_v45 }
 0x42b   : > { %v479_v46 = vpop.xlane.xlu0 %478 }
 0x42c   : > { %v480_v47 = vsub.f32 %v471_v41, %v479_v46 }
 0x42e   : > { %v481_v48 = vmul.f32 1.442695, %v480_v47 }
 0x430   : > { %898 = vpow2.f32 %v481_v48 }
 0x43a   : > { %v899_v49 = vpop.eup %898 }
 0x43b   : > { %v483_v50 = vsel %vm476_vm4, %v899_v49, 0.0 }
 0x43c   : > { %484 = vadd.xlane.f32.xlu1 %v483_v50 }
 0x44d   : > { %492 = vrot.lane.b32.xlu1 %v424_v32, %s1002_s14 }
 0x4c9   : > { %v485_v51 = vpop.xlane.xlu1 %484 }
 0x4ca   : > { %900 = vrcp.f32 %v485_v51 }
 0x4cd   : > { %v493_v52 = vpop.permute.xlu1 %492 }
 0x4ce   : > { %v499_v53 = vsel %vm497_vm5, %v493_v52, 0 }
 0x4cf   : > { %797 = vmatpush3.bf16.msra.mxu1 %v499_v53 }
 0x4d0   : > { %802 = vmatprep.subr.bf16.mxu1 %v999_v21 }
 0x4d4   : > { %v901_v54 = vpop.eup %900 }
 0x4d5   : > { %v487_v55 = vmul.f32 %v901_v54, %v485_v51 }
 0x4d7   : > { %v488_v56 = vsub.f32 2.0, %v487_v55 }
 0x4d9   : > { %v489_v57 = vmul.f32 %v901_v54, %v488_v56 }
 0x4db   : > { %v490_v58 = vmul.f32 %v899_v49, %v489_v57 }
 0x4dd   : > { %v491_v60 = vpack.c.bf16 %v490_v58, %v490_v58 }
 0x4df   : > { %799 = vmatmul.mubr.msk.bf16.vlgmr.msra.gmra.mrb[4].mxu1 %vm476_vm4, %v491_v60 }
 0x4e0   : > { %803 = vmatpush3.bf16.msra.mxu1 %v896_v59  ;;  %806 = vmatprep.mubr.msk.bf16.mxu1 %vm1000_vm2, %v999_v21 }
 0x4e1   : > { %804 = vmatprep.subr.bf16.mxu1 %v999_v21 }
 0x4e4   : > { %805 = vmatpush3.bf16.msra.mxu1 %v897_v61 }
 0x5b2   : > { %v535_v62 = vpop.f32.mrb[4].mxu1 }
 0x5b3   : > { %v542_v63 = vpack.c.bf16 %v535_v62, %v535_v62  ;;  %v800_v0 = vpop.f32.mrb[5].mxu1 }
 0x5b4   : > { %v538_v1 = vpop.f32.mrb[6].mxu1 }
 0x5b5   : > { %v801_v2 = vpop.f32.mrb[7].mxu1  ;;  %807 = vmatmul.mubr.msk.bf16.vlgmr.msra.gmra.mrb[8].mxu1 %vm429_vm3, %v542_v63 }
 0x685   : > { %607 = sbr.rel (%p747_p1) target bundleno = 1686 (0x696), region = 48 }
 0x688   : > { %v596_v4 = vpop.f32.mrb[8].mxu1 }
 0x689   : > { %v602_v5 = vadd.f32 %v596_v4, %v541_v3  ;;  %v808_v6 = vpop.f32.mrb[9].mxu1 }
 0x68a   : > { %v599_v7 = vpop.f32.mrb[10].mxu1 }
 0x68b   : > { %603 = vst [vmem:[#allocation3] sm:$0xff] %v602_v5  ;;  %v809_v8 = vpop.f32.mrb[11].mxu1 }
 0x692   : > { %v608_v9 = vld [vmem:[#allocation3] sm:$0xff] }
 0x693   : > { %v610_v11 = vadd.f32 %v609_v10, %v608_v9 }
 0x695   : > { %611 = vst [vmem:[%s257_s23] sm:$0xff] %v610_v11 }
 0x696 PF: > { %s749_s24 = sshll.u32 %s984_s22, 7  ;;  %s626_s21 = sshll.u32 %s257_s23, 4  ;;  %s627_s21 = int_to_ptr.vmem [resolvable:$true] %s626_s21 }
 0x697   : > { %s1180_s26 = scalar_lea.hbm %s1236_s5, %s749_s24  ;;  %s1247_s27 = sand.u32 1, %s972_s19  }
 0x698   : > { %s613_s7 = scalar_lea.sflag [#allocation6], %s1247_s27  ;;  %s902_s17 = scalar_lea.vmem %s627_s21, 128 }
 0x699   : > { %p903_p2 = scmp.ne.s32.totalorder %s627_s21, %s902_s17  ;;  %s1003_s8 = smov [#allocation5]  }
 0x69a   : > { %s906_s28 = sshll.u32 %s1003_s8, 4  ;;  %s907_s28 = int_to_ptr.vmem [resolvable:$false] %s906_s28 }
 0x69b   : > { %p904_p4 = pnand %p903_p2, %p1083_p3  ;;  %s908_s29 = scalar_lea.vmem %s907_s28, 256 }
 0x69c   : > { %p909_p6 = scmp.lt.s32.totalorder %s627_s21, %s907_s28  ;;  %p910_p7 = scmp.lt.s32.totalorder %s908_s29, %s902_s17 }
 0x69d   : > { %p905_p5 = pneg %p904_p4 }
 0x69e   : > { %p911_p8 = por %p910_p7, %p909_p6 }
 0x6a0   : > { %p912_p10 = pnand %p911_p8, %p905_p5 }
 0x6a2   : > { %915 = shalt.err (!%p912_p10)
}
 0x6a3   : > { %s916_s22 = scalar_lea.hbm %s1180_s26, 128  ;;  %s920_s10 = scalar_lea.hbm %s1236_s5, 256 }
 0x6a4   : > { %p917_p11 = scmp.ne.s32.totalorder %s1180_s26, %s916_s22  ;;  %p921_p0 = scmp.lt.u32.totalorder %s1180_s26, %s1236_s5 }
 0x6a5   : > { %p922_p1 = scmp.lt.u32.totalorder %s920_s10, %s916_s22  ;;  %p924_p4 = scmp.lt.u32.totalorder %s916_s22, %s1180_s26 }
 0x6a6   : > { %p918_p12 = pnand %p917_p11, %p1083_p3 }
 0x6a7   : > { %p923_p2 = por %p922_p1, %p921_p0 }
 0x6a8   : > { %p919_p13 = pneg %p918_p12 }
 0x6a9   : > { %p925_p5 = por %p924_p4, %p923_p2 }
 0x6ab   : > { %p926_p6 = pnand %p925_p5, %p919_p13 }
 0x6ad   : > { %929 = shalt.err (!%p926_p6)
}
 0x6ae   : > { %810 = dma.vmem_to_hbm [thread:$0]  (%p1083_p3), %s627_s21, 128, %s1180_s26, %s613_s7  }
 0x6af PF: > { %p816_p7 = scmp.ge.s32.totalorder %s996_s25, 2  ;;  %s638_s14 = sand.u32 1, %s968_s18  }
 0x6b0   : > { %s639_s24 = scalar_lea.sflag [#allocation6], %s638_s14 }
 0x6b1   : > { %p813_p8 = pnand %p816_p7, %p1093_p9 }
 0x6b3   : > { %963 = dma.done.wait (!%p813_p8), %s639_s24, 128  }
 0x6b4   : > { %965 = vsyncadd (!%p813_p8), %s639_s24, 4294967168  ;;  %s18_s25 = sadd.s32 1, %s996_s25   ;;  %s1248_s21 = sld [smem:[#allocation8_spill]] }
 0x6b5   : > { %p15_p10 = scmp.ge.s32.totalorder %s18_s25, 10   ;;  %s1249_s22 = sld [smem:[#allocation9_spill]] }
 0x6b6   : > { %s1250_s23 = sld [smem:[#allocation10_spill]]  ;;  %s1251_s24 = sld [smem:[#allocation11_spill]] }
 0x6b7   : > { %s1252_s18 = smov %s972_s19  ;;  %s1253_s19 = smov %s976_s20 }
 0x6b8   : > { %s1254_s20 = smov %s1101_s9  ;;  %17 = sbr.rel (!%p15_p10) target bundleno = 5 (0x5), region = 89 }
 0x6bf   :  { %644 = vsyncpa [#allocation6], 1 }
 0x6c0   :  { %646 = vsyncpa [#allocation6 + $0x1], 1 }

</bundles_post_ra>
